<compile_context>
chip_gen: v7x
topology: tpu7x:2x2x1
jax: 0.10.0
libtpu: 0.0.40
codegen_flags: <defaults>
</compile_context>

<pallas_src>
import numpy as np

import jax
import jax.numpy as jnp
from jax.experimental import pallas as pl
from jax.experimental.pallas import tpu as pltpu


# ----------------------------------------------------------------------------
# Amino-acid property tables (host-side glue, identical to the PyTorch module).
# ----------------------------------------------------------------------------
HYDROPHOBICITY = {'A': 1.8, 'C': 2.5, 'D': -3.5, 'E': -3.5, 'F': 2.8, 'G': -0.4,
                  'H': -3.2, 'I': 4.5, 'K': -3.9, 'L': 3.8, 'M': 1.9, 'N': -3.5,
                  'P': -1.6, 'Q': -3.5, 'R': -4.5, 'S': -0.8, 'T': -0.7,
                  'V': 4.2, 'W': -0.9, 'Y': -1.3}
CHARGE = {'A': 0, 'C': 0, 'D': -1, 'E': -1, 'F': 0, 'G': 0, 'H': 0.5, 'I': 0,
          'K': 1, 'L': 0, 'M': 0, 'N': 0, 'P': 0, 'Q': 0, 'R': 1, 'S': 0,
          'T': 0, 'V': 0, 'W': 0, 'Y': 0}
H_BOND_DONOR = {'A': 0, 'C': 0, 'D': 0, 'E': 0, 'F': 0, 'G': 0, 'H': 1, 'I': 0,
                'K': 1, 'L': 0, 'M': 0, 'N': 1, 'P': 0, 'Q': 1, 'R': 2, 'S': 1,
                'T': 1, 'V': 0, 'W': 1, 'Y': 1}
H_BOND_ACCEPTOR = {'A': 0, 'C': 0, 'D': 2, 'E': 2, 'F': 0, 'G': 0, 'H': 1,
                   'I': 0, 'K': 0, 'L': 0, 'M': 1, 'N': 1, 'P': 0, 'Q': 1,
                   'R': 0, 'S': 1, 'T': 1, 'V': 0, 'W': 0, 'Y': 1}

# MXU operand dtype (f32 accumulation everywhere). bf16 is MXU-native on
# v5e/v6e/v7x; elementwise math stays f32 so v5e's VPU is never asked for bf16.
MATMUL_DTYPE = jnp.bfloat16
VMEM_LIMIT_BYTES = 32 * 1024 * 1024   # safe on v5e/v6e/v7x scoped VMEM


# ----------------------------------------------------------------------------
# Small helpers
# ----------------------------------------------------------------------------
def _round_up(x, m):
    return ((x + m - 1) // m) * m


def _choose_row_tile(n_rows, bytes_per_row, max_tile=512, budget=8 << 20):
    """Largest multiple-of-8 row tile <= max_tile that stays in a VMEM budget."""
    t = min(max_tile, _round_up(max(n_rows, 8), 8))
    while t > 8 and t * bytes_per_row > budget:
        t = _round_up(t // 2, 8)
    # keep >= 2 grid steps when possible so both v7x TensorCores get work
    if t > 8 and _round_up(n_rows, t) // t < 2:
        t = _round_up(max(t // 2, 8), 8)
    return t


# ----------------------------------------------------------------------------
# Kernel 1: fused hydrophobic / charge / h-bond extractors + constraint apply
# ----------------------------------------------------------------------------
def _extractor_kernel(cw_ref, x_ref,
                      w1_ref, b1_ref, w2_ref, b2_ref, w3_ref, b3_ref,
                      props_ref, feat_ref):
    cw = cw_ref[0, 0]                         # f32 scalar from SMEM
    x = x_ref[...]                            # [T, D] f32
    tile = x.shape[0]

    # Three fused MLP heads: 3 matmuls total (bf16 operands, f32 accumulate).
    h1 = jnp.maximum(
        jnp.dot(x.astype(MATMUL_DTYPE), w1_ref[...],
                preferred_element_type=jnp.float32) + b1_ref[...], 0.0)     # [T, 3H]
    h2 = jnp.maximum(
        jnp.dot(h1.astype(MATMUL_DTYPE), w2_ref[...],
                preferred_element_type=jnp.float32) + b2_ref[...], 0.0)     # [T, 3*H/2]
    z = jnp.dot(h2.astype(MATMUL_DTYPE), w3_ref[...],
                preferred_element_type=jnp.float32) + b3_ref[...]           # [T, 8]

    # col 0: hydro logit | cols 1-3: charge logits | cols 4-5: hbond | 6-7: pad
    hydro = pl.reciprocal(1.0 + jnp.exp(-z[:, 0:1]), approx=True)           # sigmoid

    c0, c1, c2 = z[:, 1:2], z[:, 2:3], z[:, 3:4]
    m = jnp.maximum(jnp.maximum(c0, c1), c2)
    e0 = jnp.exp(c0 - m)
    e1 = jnp.exp(c1 - m)
    e2 = jnp.exp(c2 - m)
    inv = pl.reciprocal(e0 + e1 + e2, approx=True)
    p0, p1, p2 = e0 * inv, e1 * inv, e2 * inv                               # softmax

    hb = z[:, 4:6]                                                          # hbond

    # One packed store instead of three lane-sparse outputs.
    props_ref[...] = jnp.concatenate(
        [hydro, p0, p1, p2, hb, jnp.zeros((tile, 2), jnp.float32)], axis=-1)

    # Constraint modulation (all f32 elementwise).
    hydro_mod = 1.0 + cw * (hydro - 0.5)
    charge_mod = 1.0 + cw * (p0 - p1)
    hbond_mod = 1.0 + cw * (0.5 * (z[:, 4:5] + z[:, 5:6]) - 0.5)
    feat_ref[...] = x * (hydro_mod * charge_mod * hbond_mod)


def run_extractors(x2d, packed, constraint_weight):
    """x2d: [N, D] f32.  Returns (props [N, 8], constrained_features [N, D])."""
    N, D = x2d.shape
    h3 = packed['w1'].shape[1]      # 3*H
    hh3 = packed['w2'].shape[1]     # 3*H/2

    bytes_per_row = 4 * (2 * D + 8 + h3 + hh3) * 2   # in/out + intermediates, 2 bufs
    tile = _choose_row_tile(N, bytes_per_row)
    n_pad = _round_up(N, tile)
    if n_pad != N:
        x2d = jnp.pad(x2d, ((0, n_pad - N), (0, 0)))
    grid = (n_pad // tile,)

    cw = jnp.full((1, 1), constraint_weight, jnp.float32)   # works for traced scalars too
    weights = [packed[k] for k in ('w1', 'b1', 'w2', 'b2', 'w3', 'b3')]

    in_specs = [pl.BlockSpec(memory_space=pltpu.MemorySpace.SMEM),
                pl.BlockSpec((tile, D), lambda i: (i, 0))]
    for w in weights:
        in_specs.append(pl.BlockSpec(w.shape, lambda i: (0, 0)))

    out_specs = [pl.BlockSpec((tile, 8), lambda i: (i, 0)),
                 pl.BlockSpec((tile, D), lambda i: (i, 0))]
    out_shape = (jax.ShapeDtypeStruct((n_pad, 8), jnp.float32),
                 jax.ShapeDtypeStruct((n_pad, D), jnp.float32))

    props, feat = pl.pallas_call(
        _extractor_kernel,
        grid=grid,
        in_specs=in_specs,
        out_specs=out_specs,
        out_shape=out_shape,
        compiler_params=pltpu.CompilerParams(
            dimension_semantics=("parallel",),
            vmem_limit_bytes=VMEM_LIMIT_BYTES),
    )(cw, x2d, *weights)
    return props[:N], feat[:N]


# ----------------------------------------------------------------------------
# Kernel 2: pairwise spatial predictor (layer 1 precomputed per residue)
# ----------------------------------------------------------------------------
def _spatial_kernel(pa_ref, pbt_ref, w2t_ref, b2c_ref, w3c_ref, b3_ref, out_ref):
    ti = out_ref.shape[0]                       # rows (i) handled per grid step
    a_t = jnp.transpose(pa_ref[...])            # [H, TI]  (columns = residues i)
    bT = pbt_ref[...]                           # [H, Sp]  (already contains b1)
    w2t = w2t_ref[...]                          # [64, H]  bf16
    b2c = b2c_ref[...]                          # [64, 1]  f32
    w3c = w3c_ref[...]                          # [64, 1]  f32
    b3 = b3_ref[...]                            # [1, 1]   f32

    rows = []
    for t in range(ti):                         # static unroll, small TI (=8)
        a_col = a_t[:, t:t + 1]                                      # [H, 1]
        h1 = jnp.maximum(a_col + bT, 0.0)                            # [H, Sp]
        h2 = jnp.maximum(
            jnp.dot(w2t, h1.astype(MATMUL_DTYPE),
                    preferred_element_type=jnp.float32) + b2c, 0.0)  # [64, Sp]
        z = jnp.sum(h2 * w3c, axis=0, keepdims=True) + b3            # [1, Sp]
        rows.append(pl.reciprocal(1.0 + jnp.exp(-z), approx=True))   # sigmoid
    out_ref[...] = jnp.concatenate(rows, axis=0)                     # [TI, Sp] dense


def run_spatial_predictor(features, packed):
    """features: [B, S, D] f32.  Returns all-pairs predictions [B, S, S]."""
    B, S, D = features.shape
    H = packed['sw2t'].shape[1]
    sp = max(8, _round_up(S, 8))
    feats = features.astype(jnp.float32)
    if sp != S:
        feats = jnp.pad(feats, ((0, 0), (0, sp - S), (0, 0)))

    # Layer-1 projections computed once per residue (O(S*D*H) instead of O(S^2*D*H)).
    proj_a = jnp.einsum('bsd,dh->bsh', feats, packed['sw1_top'])                  # [B, Sp, H]
    proj_b = jnp.einsum('bsd,dh->bsh', feats, packed['sw1_bot']) + packed['sb1']  # [B, Sp, H]
    proj_bt = jnp.swapaxes(proj_b, 1, 2)                                          # [B, H, Sp]

    ti = 8
    grid = (B, sp // ti)
    weights = [packed['sw2t'], packed['sb2c'], packed['sw3c'], packed['sb3']]

    in_specs = [pl.BlockSpec((None, ti, H), lambda b, i: (b, i, 0)),
                pl.BlockSpec((None, H, sp), lambda b, i: (b, 0, 0))]
    for w in weights:
        in_specs.append(pl.BlockSpec(w.shape, lambda b, i: (0, 0)))

    out = pl.pallas_call(
        _spatial_kernel,
        grid=grid,
        in_specs=in_specs,
        out_specs=pl.BlockSpec((None, ti, sp), lambda b, i: (b, i, 0)),
        out_shape=jax.ShapeDtypeStruct((B, sp, sp), jnp.float32),
        compiler_params=pltpu.CompilerParams(
            dimension_semantics=("parallel", "parallel"),
            vmem_limit_bytes=VMEM_LIMIT_BYTES),
    )(proj_a, proj_bt, *weights)
    return out[:, :S, :S]


# ----------------------------------------------------------------------------
# Host-side glue: targets from sequences, losses, parameter init / packing
# ----------------------------------------------------------------------------
def build_targets(sequences, seq_len):
    B = len(sequences)
    t_hydro = np.zeros((B, seq_len, 1), np.float32)
    t_charge = np.zeros((B, seq_len, 3), np.float32)
    t_hbond = np.zeros((B, seq_len, 2), np.float32)
    for b, seq in enumerate(sequences):
        for i, aa in enumerate(seq[:seq_len]):
            if aa in HYDROPHOBICITY:
                t_hydro[b, i, 0] = (HYDROPHOBICITY[aa] + 5.0) / 10.0
            if aa in CHARGE:
                c = CHARGE[aa]
                if c > 0:
                    t_charge[b, i, 0] = 1.0
                elif c < 0:
                    t_charge[b, i, 1] = 1.0
                else:
                    t_charge[b, i, 2] = 1.0
            if aa in H_BOND_DONOR:
                t_hbond[b, i, 0] = H_BOND_DONOR[aa]
                t_hbond[b, i, 1] = H_BOND_ACCEPTOR[aa]
    return jnp.asarray(t_hydro), jnp.asarray(t_charge), jnp.asarray(t_hbond)


def _cdist(x):
    diff = x[:, :, None, :] - x[:, None, :, :]
    return jnp.sqrt(jnp.sum(diff * diff, axis=-1))


def _bce_with_logits(logits, targets):
    return jnp.mean(jnp.maximum(logits, 0.0) - logits * targets
                    + jnp.log1p(jnp.exp(-jnp.abs(logits))))


def _bce_probs_clamped(p, y):
    # Matches torch.nn.functional.binary_cross_entropy (log clamped at -100).
    log_p = jnp.maximum(jnp.log(p), -100.0)
    log_1mp = jnp.maximum(jnp.log(1.0 - p), -100.0)
    return jnp.mean(-(y * log_p + (1.0 - y) * log_1mp))


def biophysics_forward(packed, features, sequences, structures=None,
                       constraint_weight=0.1):
    B, S, D = features.shape
    x2d = features.reshape(B * S, D).astype(jnp.float32)

    props, feat2d = run_extractors(x2d, packed, constraint_weight)
    hydro = props[:, 0:1].reshape(B, S, 1)
    charge = props[:, 1:4].reshape(B, S, 3)
    hbond = props[:, 4:6].reshape(B, S, 2)
    constrained = feat2d.reshape(B, S, D)

    t_hydro, t_charge, t_hbond = build_targets(sequences, S)

    losses = {}
    # hydrophobic: MSE
    losses['hydrophobic'] = jnp.mean((hydro - t_hydro) ** 2)

    # charge: torch F.cross_entropy applied to softmax outputs as "logits"
    # (intentional parity with the PyTorch reference)
    labels = jnp.argmax(t_charge.reshape(-1, 3), axis=-1)
    p = charge.reshape(-1, 3)
    lse = jax.scipy.special.logsumexp(p, axis=-1)
    picked = jnp.take_along_axis(p, labels[:, None], axis=-1)[:, 0]
    losses['charge'] = jnp.mean(lse - picked)

    # hbond: MSE (+ geometric term if structures provided)
    hbond_loss = jnp.mean((hbond - t_hbond) ** 2)
    if structures is not None:
        d = _cdist(structures)
        hbond_mask = ((d > 2.5) & (d < 3.5)).astype(jnp.float32)
        hbond_logits = jnp.einsum('bi,bj->bij', hbond[:, :, 0], hbond[:, :, 1])
        hbond_loss = hbond_loss + 0.5 * _bce_with_logits(hbond_logits, hbond_mask)
    losses['hbond'] = hbond_loss

    # spatial constraint (only when structures are given)
    if structures is not None:
        d = _cdist(structures)
        contacts = (d < 8.0).astype(jnp.float32)
        pred_all = run_spatial_predictor(features.astype(jnp.float32), packed)
        upper = jnp.triu(jnp.ones((S, S), dtype=bool), k=1)
        spatial_pred = jnp.where(upper, pred_all, 0.0)
        spatial_pred = spatial_pred + jnp.swapaxes(spatial_pred, -1, -2)
        # Diagonal stays 0 while contacts diag is 1 -> clamped -log(0)=100 term
        # per diagonal element; this matches the PyTorch reference exactly.
        losses['spatial'] = _bce_probs_clamped(spatial_pred, contacts)

    return constrained, losses


def init_params(key, feature_dim, hidden_dim):
    """Deterministic synthetic init (PyTorch-Linear-like uniform), weights [in, out]."""
    Hh = hidden_dim // 2

    def linear(k, fan_in, fan_out):
        kw, kb = jax.random.split(k)
        bound = 1.0 / np.sqrt(fan_in)
        w = jax.random.uniform(kw, (fan_in, fan_out), jnp.float32, -bound, bound)
        b = jax.random.uniform(kb, (1, fan_out), jnp.float32, -bound, bound)
        return w, b

    ks = jax.random.split(key, 12)
    p = {}
    p['hw1'], p['hb1'] = linear(ks[0], feature_dim, hidden_dim)
    p['hw2'], p['hb2'] = linear(ks[1], hidden_dim, Hh)
    p['hw3'], p['hb3'] = linear(ks[2], Hh, 1)
    p['cw1'], p['cb1'] = linear(ks[3], feature_dim, hidden_dim)
    p['cw2'], p['cb2'] = linear(ks[4], hidden_dim, Hh)
    p['cw3'], p['cb3'] = linear(ks[5], Hh, 3)
    p['bw1'], p['bb1'] = linear(ks[6], feature_dim, hidden_dim)
    p['bw2'], p['bb2'] = linear(ks[7], hidden_dim, Hh)
    p['bw3'], p['bb3'] = linear(ks[8], Hh, 2)
    p['sw1'], p['sb1'] = linear(ks[9], feature_dim * 2, hidden_dim)
    p['sw2'], p['sb2'] = linear(ks[10], hidden_dim, 64)
    p['sw3'], p['sb3'] = linear(ks[11], 64, 1)
    return p


def pack_params(p, matmul_dtype=MATMUL_DTYPE):
    """Fuse the three extractor heads into packed slabs and pre-arrange the
    spatial predictor weights for the pair kernel."""
    D = p['hw1'].shape[0]
    Hh = p['hw2'].shape[1]

    w1 = jnp.concatenate([p['hw1'], p['cw1'], p['bw1']], axis=1)           # [D, 3H]
    b1 = jnp.concatenate([p['hb1'], p['cb1'], p['bb1']], axis=1)           # [1, 3H]
    w2 = jax.scipy.linalg.block_diag(p['hw2'], p['cw2'], p['bw2'])         # [3H, 3Hh]
    b2 = jnp.concatenate([p['hb2'], p['cb2'], p['bb2']], axis=1)           # [1, 3Hh]
    w3 = jnp.zeros((3 * Hh, 8), jnp.float32)
    w3 = w3.at[0:Hh, 0:1].set(p['hw3'])
    w3 = w3.at[Hh:2 * Hh, 1:4].set(p['cw3'])
    w3 = w3.at[2 * Hh:3 * Hh, 4:6].set(p['bw3'])
    b3 = jnp.zeros((1, 8), jnp.float32)
    b3 = b3.at[:, 0:1].set(p['hb3']).at[:, 1:4].set(p['cb3']).at[:, 4:6].set(p['bb3'])

    return {
        # fused extractor heads (matmul operands in bf16, biases f32)
        'w1': w1.astype(matmul_dtype), 'b1': b1,
        'w2': w2.astype(matmul_dtype), 'b2': b2,
        'w3': w3.astype(matmul_dtype), 'b3': b3,
        # spatial predictor: layer-1 split into i-half / j-half (f32, used once)
        'sw1_top': p['sw1'][:D, :], 'sw1_bot': p['sw1'][D:, :], 'sb1': p['sb1'],
        'sw2t': p['sw2'].T.astype(matmul_dtype),   # [64, H]
        'sb2c': p['sb2'].T,                        # [64, 1]
        'sw3c': p['sw3'],                          # [64, 1]
        'sb3': p['sb3'],                           # [1, 1]
    }


if __name__ == "__main__":
    B, S, D, H = 2, 8, 32, 32
    constraint_weight = 0.1

    key = jax.random.PRNGKey(0)
    kf, kstruct, kp = jax.random.split(key, 3)
    features = jax.random.normal(kf, (B, S, D), jnp.float32)
    structures = jax.random.normal(kstruct, (B, S, 3), jnp.float32) * 4.0
    sequences = ["ACDEFGHI", "KLMNPQRS"]

    params = init_params(kp, D, H)
    packed = pack_params(params)

    # TODO(synk): amino-acid target construction from Python strings stays on
    # the host (dict lookups); scalar loss reductions stay as plain JAX ops.
    constrained, losses = biophysics_forward(
        packed, features, sequences, structures, constraint_weight)

    jax.block_until_ready(constrained)
    for v in losses.values():
        jax.block_until_ready(v)

    print("KERNEL_OK")
</pallas_src>

<mosaic_0001>
module attributes {stable_mosaic.version = 11 : i64} {
  func.func @_extractor_kernel(%arg0: i32, %arg1: memref<1x1xf32, #tpu.memory_space<smem>>, %arg2: memref<8x32xf32, #tpu.memory_space<vmem>>, %arg3: memref<32x96xbf16, #tpu.memory_space<vmem>>, %arg4: memref<1x96xf32, #tpu.memory_space<vmem>>, %arg5: memref<96x48xbf16, #tpu.memory_space<vmem>>, %arg6: memref<1x48xf32, #tpu.memory_space<vmem>>, %arg7: memref<48x8xbf16, #tpu.memory_space<vmem>>, %arg8: memref<1x8xf32, #tpu.memory_space<vmem>>, %arg9: memref<8x8xf32, #tpu.memory_space<vmem>>, %arg10: memref<8x32xf32, #tpu.memory_space<vmem>>) attributes {dimension_semantics = [#tpu.dimension_semantics<parallel>], iteration_bounds = array<i64: 2>, scalar_prefetch = 0 : i64, scratch_operands = 0 : i64, tpu.core_type = #tpu.core_type<tc>, window_params = [{transform_indices = @transform_0, window_bounds = array<i64: 1, 1>}, {transform_indices = @transform_1, window_bounds = array<i64: 8, 32>}, {pipeline_mode = #tpu.pipeline_mode<synchronous>, transform_indices = @transform_2, window_bounds = array<i64: 32, 96>}, {pipeline_mode = #tpu.pipeline_mode<synchronous>, transform_indices = @transform_3, window_bounds = array<i64: 1, 96>}, {pipeline_mode = #tpu.pipeline_mode<synchronous>, transform_indices = @transform_4, window_bounds = array<i64: 96, 48>}, {pipeline_mode = #tpu.pipeline_mode<synchronous>, transform_indices = @transform_5, window_bounds = array<i64: 1, 48>}, {pipeline_mode = #tpu.pipeline_mode<synchronous>, transform_indices = @transform_6, window_bounds = array<i64: 48, 8>}, {pipeline_mode = #tpu.pipeline_mode<synchronous>, transform_indices = @transform_7, window_bounds = array<i64: 1, 8>}, {transform_indices = @transform_8, window_bounds = array<i64: 8, 8>}, {transform_indices = @transform_9, window_bounds = array<i64: 8, 32>}]} {
    %c0 = arith.constant 0 : index
    %c0_0 = arith.constant 0 : index
    %0 = memref.load %arg1[%c0, %c0_0] : memref<1x1xf32, #tpu.memory_space<smem>>
    %c0_1 = arith.constant 0 : index
    %c0_2 = arith.constant 0 : index
    %1 = vector.load %arg2[%c0_1, %c0_2] : memref<8x32xf32, #tpu.memory_space<vmem>>, vector<8x32xf32>
    %2 = arith.truncf %1 : vector<8x32xf32> to vector<8x32xbf16>
    %c0_3 = arith.constant 0 : index
    %c0_4 = arith.constant 0 : index
    %3 = vector.load %arg3[%c0_3, %c0_4] : memref<32x96xbf16, #tpu.memory_space<vmem>>, vector<32x96xbf16>
    %cst = arith.constant dense<0.000000e+00> : vector<8x96xf32>
    %4 = tpu.matmul %2, %3, %cst {dimension_numbers = #tpu.dot_dimension_numbers<[1], [0], [0], [1], [0, 0, 1, 1], [], []>} : vector<8x32xbf16>, vector<32x96xbf16>, vector<8x96xf32> -> vector<8x96xf32>
    %c0_5 = arith.constant 0 : index
    %c0_6 = arith.constant 0 : index
    %5 = vector.load %arg4[%c0_5, %c0_6] : memref<1x96xf32, #tpu.memory_space<vmem>>, vector<1x96xf32>
    %6 = vector.broadcast %5 : vector<1x96xf32> to vector<8x96xf32>
    %7 = arith.addf %4, %6 : vector<8x96xf32>
    %cst_7 = arith.constant 0.000000e+00 : f32
    %8 = vector.broadcast %cst_7 : f32 to vector<8x96xf32>
    %9 = arith.maximumf %7, %8 : vector<8x96xf32>
    %10 = arith.truncf %9 : vector<8x96xf32> to vector<8x96xbf16>
    %c0_8 = arith.constant 0 : index
    %c0_9 = arith.constant 0 : index
    %11 = vector.load %arg5[%c0_8, %c0_9] : memref<96x48xbf16, #tpu.memory_space<vmem>>, vector<96x48xbf16>
    %cst_10 = arith.constant dense<0.000000e+00> : vector<8x48xf32>
    %12 = tpu.matmul %10, %11, %cst_10 {dimension_numbers = #tpu.dot_dimension_numbers<[1], [0], [0], [1], [0, 0, 1, 1], [], []>} : vector<8x96xbf16>, vector<96x48xbf16>, vector<8x48xf32> -> vector<8x48xf32>
    %c0_11 = arith.constant 0 : index
    %c0_12 = arith.constant 0 : index
    %13 = vector.load %arg6[%c0_11, %c0_12] : memref<1x48xf32, #tpu.memory_space<vmem>>, vector<1x48xf32>
    %14 = vector.broadcast %13 : vector<1x48xf32> to vector<8x48xf32>
    %15 = arith.addf %12, %14 : vector<8x48xf32>
    %cst_13 = arith.constant 0.000000e+00 : f32
    %16 = vector.broadcast %cst_13 : f32 to vector<8x48xf32>
    %17 = arith.maximumf %15, %16 : vector<8x48xf32>
    %18 = arith.truncf %17 : vector<8x48xf32> to vector<8x48xbf16>
    %c0_14 = arith.constant 0 : index
    %c0_15 = arith.constant 0 : index
    %19 = vector.load %arg7[%c0_14, %c0_15] : memref<48x8xbf16, #tpu.memory_space<vmem>>, vector<48x8xbf16>
    %cst_16 = arith.constant dense<0.000000e+00> : vector<8x8xf32>
    %20 = tpu.matmul %18, %19, %cst_16 {dimension_numbers = #tpu.dot_dimension_numbers<[1], [0], [0], [1], [0, 0, 1, 1], [], []>} : vector<8x48xbf16>, vector<48x8xbf16>, vector<8x8xf32> -> vector<8x8xf32>
    %c0_17 = arith.constant 0 : index
    %c0_18 = arith.constant 0 : index
    %21 = vector.load %arg8[%c0_17, %c0_18] : memref<1x8xf32, #tpu.memory_space<vmem>>, vector<1x8xf32>
    %22 = vector.broadcast %21 : vector<1x8xf32> to vector<8x8xf32>
    %23 = arith.addf %20, %22 : vector<8x8xf32>
    %24 = vector.extract_strided_slice %23 {offsets = [0, 0], sizes = [8, 1], strides = [1, 1]} : vector<8x8xf32> to vector<8x1xf32>
    %cst_19 = arith.constant 0.000000e+00 : f32
    %25 = vector.broadcast %cst_19 : f32 to vector<8x1xf32>
    %26 = arith.subf %25, %24 : vector<8x1xf32>
    %27 = math.exp %26 : vector<8x1xf32>
    %cst_20 = arith.constant 1.000000e+00 : f32
    %28 = vector.broadcast %cst_20 : f32 to vector<8x1xf32>
    %29 = arith.addf %28, %27 : vector<8x1xf32>
    %30 = tpu.reciprocal %29 {approx = true} : vector<8x1xf32> -> vector<8x1xf32>
    %31 = vector.extract_strided_slice %23 {offsets = [0, 1], sizes = [8, 1], strides = [1, 1]} : vector<8x8xf32> to vector<8x1xf32>
    %32 = vector.extract_strided_slice %23 {offsets = [0, 2], sizes = [8, 1], strides = [1, 1]} : vector<8x8xf32> to vector<8x1xf32>
    %33 = vector.extract_strided_slice %23 {offsets = [0, 3], sizes = [8, 1], strides = [1, 1]} : vector<8x8xf32> to vector<8x1xf32>
    %34 = arith.maximumf %31, %32 : vector<8x1xf32>
    %35 = arith.maximumf %34, %33 : vector<8x1xf32>
    %36 = arith.subf %31, %35 : vector<8x1xf32>
    %37 = math.exp %36 : vector<8x1xf32>
    %38 = arith.subf %32, %35 : vector<8x1xf32>
    %39 = math.exp %38 : vector<8x1xf32>
    %40 = arith.subf %33, %35 : vector<8x1xf32>
    %41 = math.exp %40 : vector<8x1xf32>
    %42 = arith.addf %37, %39 : vector<8x1xf32>
    %43 = arith.addf %42, %41 : vector<8x1xf32>
    %44 = tpu.reciprocal %43 {approx = true} : vector<8x1xf32> -> vector<8x1xf32>
    %45 = arith.mulf %37, %44 : vector<8x1xf32>
    %46 = arith.mulf %39, %44 : vector<8x1xf32>
    %47 = arith.mulf %41, %44 : vector<8x1xf32>
    %48 = vector.extract_strided_slice %23 {offsets = [0, 4], sizes = [8, 2], strides = [1, 1]} : vector<8x8xf32> to vector<8x2xf32>
    %cst_21 = arith.constant 0.000000e+00 : f32
    %49 = vector.broadcast %cst_21 : f32 to vector<8x2xf32>
    %50 = tpu.concatenate %30, %45, %46, %47, %48, %49 in 1 : vector<8x1xf32>, vector<8x1xf32>, vector<8x1xf32>, vector<8x1xf32>, vector<8x2xf32>, vector<8x2xf32> -> vector<8x8xf32>
    %c0_22 = arith.constant 0 : index
    %c0_23 = arith.constant 0 : index
    %51 = vector.load %arg9[%c0_22, %c0_23] : memref<8x8xf32, #tpu.memory_space<vmem>>, vector<8x8xf32>
    tpu.vector_store %arg9[%c0_22, %c0_23], %50 {strides = array<i32>} : memref<8x8xf32, #tpu.memory_space<vmem>>, vector<8x8xf32>,
    %cst_24 = arith.constant 5.000000e-01 : f32
    %52 = vector.broadcast %cst_24 : f32 to vector<8x1xf32>
    %53 = arith.subf %30, %52 : vector<8x1xf32>
    %54 = vector.broadcast %0 : f32 to vector<8x1xf32>
    %55 = arith.mulf %54, %53 : vector<8x1xf32>
    %cst_25 = arith.constant 1.000000e+00 : f32
    %56 = vector.broadcast %cst_25 : f32 to vector<8x1xf32>
    %57 = arith.addf %56, %55 : vector<8x1xf32>
    %58 = arith.subf %45, %46 : vector<8x1xf32>
    %59 = vector.broadcast %0 : f32 to vector<8x1xf32>
    %60 = arith.mulf %59, %58 : vector<8x1xf32>
    %cst_26 = arith.constant 1.000000e+00 : f32
    %61 = vector.broadcast %cst_26 : f32 to vector<8x1xf32>
    %62 = arith.addf %61, %60 : vector<8x1xf32>
    %63 = vector.extract_strided_slice %23 {offsets = [0, 4], sizes = [8, 1], strides = [1, 1]} : vector<8x8xf32> to vector<8x1xf32>
    %64 = vector.extract_strided_slice %23 {offsets = [0, 5], sizes = [8, 1], strides = [1, 1]} : vector<8x8xf32> to vector<8x1xf32>
    %65 = arith.addf %63, %64 : vector<8x1xf32>
    %cst_27 = arith.constant 5.000000e-01 : f32
    %66 = vector.broadcast %cst_27 : f32 to vector<8x1xf32>
    %67 = arith.mulf %66, %65 : vector<8x1xf32>
    %cst_28 = arith.constant 5.000000e-01 : f32
    %68 = vector.broadcast %cst_28 : f32 to vector<8x1xf32>
    %69 = arith.subf %67, %68 : vector<8x1xf32>
    %70 = vector.broadcast %0 : f32 to vector<8x1xf32>
    %71 = arith.mulf %70, %69 : vector<8x1xf32>
    %cst_29 = arith.constant 1.000000e+00 : f32
    %72 = vector.broadcast %cst_29 : f32 to vector<8x1xf32>
    %73 = arith.addf %72, %71 : vector<8x1xf32>
    %74 = arith.mulf %57, %62 : vector<8x1xf32>
    %75 = arith.mulf %74, %73 : vector<8x1xf32>
    %76 = vector.broadcast %75 : vector<8x1xf32> to vector<8x32xf32>
    %77 = arith.mulf %1, %76 : vector<8x32xf32>
    %c0_30 = arith.constant 0 : index
    %c0_31 = arith.constant 0 : index
    %78 = vector.load %arg10[%c0_30, %c0_31] : memref<8x32xf32, #tpu.memory_space<vmem>>, vector<8x32xf32>
    tpu.vector_store %arg10[%c0_30, %c0_31], %77 {strides = array<i32>} : memref<8x32xf32, #tpu.memory_space<vmem>>, vector<8x32xf32>,
    return
  }
  func.func @transform_0(%arg0: i32) -> (i32, i32) {
    %c0_i32 = arith.constant 0 : i32
    %c0_i32_0 = arith.constant 0 : i32
    %c0_i32_1 = arith.constant 0 : i32
    return %c0_i32, %c0_i32_0 : i32, i32
  }
  func.func @transform_1(%arg0: i32) -> (i32, i32) {
    %c0_i32 = arith.constant 0 : i32
    %c0_i32_0 = arith.constant 0 : i32
    return %arg0, %c0_i32 : i32, i32
  }
  func.func @transform_2(%arg0: i32) -> (i32, i32) {
    %c0_i32 = arith.constant 0 : i32
    %c0_i32_0 = arith.constant 0 : i32
    %c0_i32_1 = arith.constant 0 : i32
    return %c0_i32, %c0_i32_0 : i32, i32
  }
  func.func @transform_3(%arg0: i32) -> (i32, i32) {
    %c0_i32 = arith.constant 0 : i32
    %c0_i32_0 = arith.constant 0 : i32
    %c0_i32_1 = arith.constant 0 : i32
    return %c0_i32, %c0_i32_0 : i32, i32
  }
  func.func @transform_4(%arg0: i32) -> (i32, i32) {
    %c0_i32 = arith.constant 0 : i32
    %c0_i32_0 = arith.constant 0 : i32
    %c0_i32_1 = arith.constant 0 : i32
    return %c0_i32, %c0_i32_0 : i32, i32
  }
  func.func @transform_5(%arg0: i32) -> (i32, i32) {
    %c0_i32 = arith.constant 0 : i32
    %c0_i32_0 = arith.constant 0 : i32
    %c0_i32_1 = arith.constant 0 : i32
    return %c0_i32, %c0_i32_0 : i32, i32
  }
  func.func @transform_6(%arg0: i32) -> (i32, i32) {
    %c0_i32 = arith.constant 0 : i32
    %c0_i32_0 = arith.constant 0 : i32
    %c0_i32_1 = arith.constant 0 : i32
    return %c0_i32, %c0_i32_0 : i32, i32
  }
  func.func @transform_7(%arg0: i32) -> (i32, i32) {
    %c0_i32 = arith.constant 0 : i32
    %c0_i32_0 = arith.constant 0 : i32
    %c0_i32_1 = arith.constant 0 : i32
    return %c0_i32, %c0_i32_0 : i32, i32
  }
  func.func @transform_8(%arg0: i32) -> (i32, i32) {
    %c0_i32 = arith.constant 0 : i32
    %c0_i32_0 = arith.constant 0 : i32
    return %arg0, %c0_i32 : i32, i32
  }
  func.func @transform_9(%arg0: i32) -> (i32, i32) {
    %c0_i32 = arith.constant 0 : i32
    %c0_i32_0 = arith.constant 0 : i32
    return %arg0, %c0_i32 : i32, i32
  }
}

</mosaic_0001>

<bundles_post_ra>
// kernel: tpu_custom_call.1
= control target key start
LH: loop header
LB: loop body
LE: loop exit
PB: predicated region body
PF: predicated region fallthrough
CT: control target
= control target key end

     0   :  { %s1243_s0 = inlined_call_operand.<no memory space> [shape: f32[1,1], index: 0, kind: input, shape index: {}]   ;;  %s1244_s1 = inlined_call_operand.vmem [shape: f32[16,32], index: 1, kind: input, shape index: {}]   ;;  %s1245_s2 = inlined_call_operand.vmem [shape: bf16[32,96], index: 2, kind: input, shape index: {}]   ;;  %s1246_s3 = inlined_call_operand.vmem [shape: f32[1,96], index: 3, kind: input, shape index: {}]   ;;  %s1247_s4 = inlined_call_operand.vmem [shape: bf16[96,48], index: 4, kind: input, shape index: {}]   ;;  %s1248_s5 = inlined_call_operand.vmem [shape: f32[1,48], index: 5, kind: input, shape index: {}]   ;;  %s1249_s6 = inlined_call_operand.vmem [shape: bf16[48,8], index: 6, kind: input, shape index: {}]   ;;  %s1250_s7 = inlined_call_operand.vmem [shape: f32[1,8], index: 7, kind: input, shape index: {}]   ;;  %s1251_s8 = inlined_call_operand.vmem [shape: f32[16,8], index: 8, kind: output, shape index: {0}]   ;;  %s1252_s9 = inlined_call_operand.hbm [shape: f32[16,32], index: 9, kind: output, shape index: {1}]  }
   0x1   :  { %15 = sst [smem:[#allocation2]] %s1243_s0 }
   0x2   :  { %16 = vsyncpa [#allocation4], 0 }
   0x3   :  { %18 = vsyncpa [#allocation4 + $0x1], 0  ;;  %s1064_s11 = smov 0   ;;  %s1066_s12 = smov 0  }
   0x4   :  { %s1068_s13 = smov 0   ;;  %s1070_s14 = smov 0  }
   0x5 LB: > { %s1085_s0 = sadd.s32 4294967295, %s1000_s14   ;;  %s789_s15 = sadd.s32 4294967294, %s1000_s14   ;;  %s1000_s14 = sphi %s1070_s14, %s1258_s14   ;;  %s996_s13 = sphi %s1068_s13, %s1257_s13   ;;  %s992_s12 = sphi %s1066_s12, %s1256_s12   ;;  %s988_s11 = sphi %s1064_s11, %s1255_s11  }
   0x6   : > { %s1089_s16 = sadd.s32 1, %s1000_s14   ;;  %s230_s17 = sadd.s32 1, %s996_s13 }
   0x7   : > { %s227_s18 = ssub.s32 %s1000_s14, %s1089_s16  ;;  %p240_p0 = scmp.ne.s32.totalorder %s996_s13, %s992_s12 }
   0x8   : > { %p228_p1 = scmp.eq.s32.totalorder %s227_s18, 0  ;;  %p241_p2 = scmp.eq.s32.totalorder %s1085_s0, 1 }
   0x9   : > { %p246_p3 = scmp.ne.s32.totalorder %s992_s12, %s988_s11  ;;  %p247_p4 = scmp.eq.s32.totalorder %s789_s15, 1 }
   0xa   : > { %s1100_s19 = scalar_select %p228_p1, %s996_s13, %s230_s17  }
   0xb   : > { %p1102_p5 = por %p241_p2, %p240_p0  ;;  %p1106_p6 = por %p247_p4, %p246_p3 }
   0xc   : > { %p792_p7 = scmp.ge.s32.totalorder %s1000_s14, 1  ;;  %p293_p8 = scmp.lt.s32.totalorder %s1000_s14, 3 }
   0xe   : > { %p294_p9 = pnand %p792_p7, %p293_p8 }
   0xf   : > { %v915_v0 = vld [vmem:[%s1245_s2] sm:$0xff] (!%p294_p9)   ;;  %v1002_v1 = vmov (!%p294_p9), 0.0   ;;  %v916_v2 = vld [vmem:[%s1245_s2 + $0x8] sm:$0xff] (!%p294_p9)   ;;  %vm1003_vm0 = vmmov (!%p294_p9), 0   ;;  %p332_p10 = scmp.lt.s32.totalorder (!%p294_p9), %s1085_s0, 1  ;;  %v919_v5 = vld [vmem:[%s1247_s4 + $0x10] sm:$0xff] (!%p294_p9)  }
  0x10   : > { %297 = sbr.rel (%p294_p9) target bundleno = 1564 (0x61c), region = 52  ;;  %833 = vmatprep.subr.bf16.mxu0 (!%p294_p9), %v1002_v1  ;;  %841 = vmatprep.subr.bf16.mxu1 (!%p294_p9), %v1002_v1  ;;  %v917_v3 = vld [vmem:[%s1247_s4] sm:$0xff] (!%p294_p9)   ;;  %v918_v4 = vld [vmem:[%s1247_s4 + $0x8] sm:$0xff] (!%p294_p9)   ;;  %vm367_vm1 = vcmask (!%p294_p9), 261120   ;;  %v920_v8 = vld [vmem:[%s1247_s4 + $0x18] sm:$0xff] (!%p294_p9)   ;;  %vm468_vm2 = vcmask (!%p294_p9), 785408  }
  0x11   : > { %834 = vmatpush3.bf16.msra.mxu0 (!%p294_p9), %v915_v0  ;;  %837 = vmatprep.mubr.msk.bf16.mxu0 (!%p294_p9), %vm1003_vm0, %v1002_v1  ;;  %v921_v9 = vld [vmem:[%s1247_s4 + $0x20] sm:$0xff] (!%p294_p9)   ;;  %v922_v10 = vld [vmem:[%s1247_s4 + $0x28] sm:$0xff] (!%p294_p9)   ;;  %v925_v21 = vld [vmem:[%s1249_s6 + $0x10] sm:$0xff] (!%p294_p9)   ;;  %vm545_vm3 = vcmask (!%p294_p9), 392192   ;;  %s1004_s17 = smov (!%p294_p9), 127   ;;  %s1006_s22 = smov (!%p294_p9), 1  }
  0x12   : > { %835 = vmatprep.subr.bf16.mxu0 (!%p294_p9), %v1002_v1  ;;  %853 = vmatprep.mubr.msk.bf16.mxu1 (!%p294_p9), %vm1003_vm0, %v1002_v1  ;;  %v923_v11 = vld [vmem:[%s1249_s6] sm:$0xff] (!%p294_p9)   ;;  %v924_v20 = vld [vmem:[%s1249_s6 + $0x8] sm:$0xff] (!%p294_p9)   ;;  %s1007_s23 = smov (!%p294_p9), 2   ;;  %s341_s24 = sld [smem:[#allocation2]] (!%p294_p9)  ;;  %vm640_vm4 = vcmask (!%p294_p9), 7168   ;;  %vm642_vm5 = vcmask (!%p294_p9), 15360  }
  0x13   : > { %842 = vmatpush3.bf16.msra.mxu1 (!%p294_p9), %v917_v3  ;;  %v796_v12 = vld [vmem:[%s1246_s3] ss:$0 sm:$0xff] (!%p294_p9)  ;;  %s1008_s25 = smov (!%p294_p9), 124   ;;  %vm644_vm6 = vcmask (!%p294_p9), 23552   ;;  %vm646_vm7 = vcmask (!%p294_p9), 31744   ;;  %vm648_vm8 = vcmask (!%p294_p9), 48128  }
  0x14   : > { %843 = vmatprep.subr.bf16.mxu1 (!%p294_p9), %v1002_v1  ;;  %v800_v22 = vld [vmem:[%s1248_s5] ss:$0 sm:$0xff] (!%p294_p9)  ;;  %vm650_vm9 = vcmask (!%p294_p9), 64512   ;;  %s816_s15 = sshll.u32 (!%p294_p9), %s1085_s0, 7 }
  0x15   : > { %836 = vmatpush3.bf16.msra.mxu0 (!%p294_p9), %v916_v2  ;;  %v808_v30 = vld [vmem:[%s1250_s7] ss:$0 sm:$0xff] (!%p294_p9) }
  0x16   : > { %857 = vmatprep.subr.bf16.mxu0 (!%p294_p9), %v1002_v1 }
  0x17   : > { %s1125_s28 = scalar_select %p332_p10, %s1085_s0, 1  ;;  %844 = vmatpush3.bf16.msra.mxu1 %v918_v4 }
  0x18   : > { %845 = vmatprep.subr.bf16.mxu1 %v1002_v1  ;;  %s1010_s0 = smov [#allocation3]  }
  0x19   : > { %s794_s10 = sshll.u32 %s1125_s28, 3  ;;  %s329_s28 = sand.u32 1, %s992_s12  }
  0x1a   : > { %s335_s18 = scalar_lea.vmem %s1244_s1, %s794_s10  ;;  %s339_s29 = scalar_lea.vmem %s1251_s8, %s794_s10 }
  0x1b   : > { %v1139_v6 = vld [vmem:[%s335_s18] sm:$0xff]  ;;  %846 = vmatpush3.bf16.msra.mxu1 %v919_v5  ;;  %s1005_s18 = smov 126   ;;  %s793_s30 = sshll.u32 %s329_s28, 3 }
  0x1c   : > { %v343_v7 = vpack.c.bf16 %v1139_v6, %v1139_v6  ;;  %847 = vmatprep.subr.bf16.mxu1 %v1002_v1  ;;  %s942_s26 = sshll.u32 %s1010_s0, 4  ;;  %s943_s26 = int_to_ptr.vmem [resolvable:$false] %s942_s26 }
  0x1d   : > { %s944_s27 = scalar_lea.vmem %s943_s26, 256 }
  0x1e   : > { %838 = vmatmul.mubr.msk.bf16.vlgmr.msra.gmra.mrb[0].mxu0 %vm367_vm1, %v343_v7 }
  0x1f   : > { %863 = vmatprep.mubr.msk.bf16.mxu0 %vm1003_vm0, %v1002_v1  ;;  %848 = vmatpush3.bf16.msra.mxu1 %v920_v8 }
  0x20   : > { %849 = vmatprep.subr.bf16.mxu1 %v1002_v1  ;;  %858 = vmatpush3.bf16.msra.mxu0 %v923_v11 }
  0x21   : > { %859 = vmatprep.subr.bf16.mxu0 %v1002_v1 }
  0x23   : > { %850 = vmatpush3.bf16.msra.mxu1 %v921_v9  ;;  %v1009_v9 = vmov 0  }
  0x24   : > { %851 = vmatprep.subr.bf16.mxu1 %v1002_v1  ;;  %860 = vmatpush3.bf16.msra.mxu0 %v924_v20 }
  0x25   : > { %861 = vmatprep.subr.bf16.mxu0 %v1002_v1  ;;  %v653_v1 = vstv %s341_s24  ;;  %914 = vset.pattern.permute.xlu0 %v1009_v9  ;;  %s690_s24 = scalar_lea.sflag [#allocation4], %s329_s28 }
  0x27   : > { %852 = vmatpush3.bf16.msra.mxu1 %v922_v10 }
  0x28   : > { %862 = vmatpush3.bf16.msra.mxu0 %v925_v21 }
  0xf1   : > { %v405_v13 = vpop.f32.mrb[0].mxu0 }
  0xf2   : > { %v406_v14 = vadd.f32 %v796_v12, %v405_v13  ;;  %v839_v15 = vpop.f32.mrb[1].mxu0 }
  0xf3   : > { %v408_v16 = vpop.f32.mrb[2].mxu0 }
  0xf4   : > { %v411_v17 = vmax.f32 %v406_v14, 0.0  ;;  %v840_v18 = vpop.f32.mrb[3].mxu0 }
  0xf6   : > { %v412_v19 = vpack.c.bf16 %v411_v17, %v411_v17 }
  0xf8   : > { %854 = vmatmul.mubr.msk.bf16.vlgmr.msra.gmra.mrb[0].mxu1 %vm468_vm2, %v412_v19 }
 0x1cb   : > { %v506_v23 = vpop.f32.mrb[0].mxu1 }
 0x1cc   : > { %v507_v24 = vadd.f32 %v800_v22, %v506_v23  ;;  %v855_v25 = vpop.f32.mrb[1].mxu1 }
 0x1cd   : > { %v509_v26 = vpop.f32.mrb[2].mxu1 }
 0x1ce   : > { %v512_v27 = vmax.f32 %v507_v24, 0.0  ;;  %v856_v28 = vpop.f32.mrb[3].mxu1 }
 0x1d0   : > { %v513_v29 = vpack.c.bf16 %v512_v27, %v512_v27 }
 0x1d2   : > { %864 = vmatmul.mubr.msk.bf16.vlgmr.msra.gmra.mrb[4].mxu0 %vm545_vm3, %v513_v29 }
 0x2a5   : > { %v583_v31 = vpop.f32.mrb[4].mxu0 }
 0x2a6   : > { %v1172_v32 = vadd.f32 %v808_v30, %v583_v31  ;;  %v865_v33 = vpop.f32.mrb[5].mxu0 }
 0x2a7   : > { %v586_v34 = vpop.f32.mrb[6].mxu0 }
 0x2a8   : > { %595 = vrot.lane.b32.xlu0 %v1172_v32, %s1004_s17  ;;  %v866_v35 = vpop.f32.mrb[7].mxu0  ;;  %v589_v56 = vsub.f32 0.0, %v1172_v32 }
 0x2aa   : > { %v590_v57 = vmul.f32 1.442695, %v589_v56 }
 0x2ac   : > { %599 = vrot.lane.b32.xlu0 %v1172_v32, %s1005_s18 }
 0x31a   : > { %v596_v36 = vpop.permute.xlu0 %595 }
 0x31b   : > { %v598_v37 = vmax.f32 %v1172_v32, %v596_v36  ;;  %v663_v60 = vadd.f32 %v596_v36, %v1172_v32 }
 0x31d   : > { %v664_v61 = vmul.f32 0.5, %v663_v60 }
 0x31e   : > { %v600_v38 = vpop.permute.xlu0 %599 }
 0x31f   : > { %v602_v39 = vmax.f32 %v598_v37, %v600_v38  ;;  %v814_v62 = vadd.f32 -0.5, %v664_v61 }
 0x321   : > { %607 = vrot.lane.b32.xlu1 %v602_v39, %s1006_s22  ;;  %v603_v48 = vsub.f32 %v1172_v32, %v602_v39  ;;  %v666_v4 = vmul.f32 %v814_v62, %v653_v1 }
 0x323   : > { %v604_v49 = vmul.f32 1.442695, %v603_v48  ;;  %v667_v8 = vadd.f32 1.0, %v666_v4 }
 0x325   : > { %613 = vrot.lane.b32.xlu1 %v602_v39, %s1007_s23 }
 0x393   : > { %v608_v40 = vpop.permute.xlu1 %607 }
 0x394   : > { %v610_v41 = vsub.f32 %v1172_v32, %v608_v40 }
 0x396   : > { %v611_v42 = vmul.f32 1.442695, %v610_v41 }
 0x397   : > { %v614_v43 = vpop.permute.xlu1 %613 }
 0x398   : > { %926 = vpow2.f32 %v611_v42  ;;  %v616_v44 = vsub.f32 %v1172_v32, %v614_v43 }
 0x39a   : > { %v617_v45 = vmul.f32 1.442695, %v616_v44 }
 0x39c   : > { %928 = vpow2.f32 %v617_v45 }
 0x39d   : > { %930 = vpow2.f32 %v604_v49 }
 0x3a2   : > { %v927_v46 = vpop.eup %926 }
 0x3a3   : > { %620 = vrot.lane.b32.xlu0 %v927_v46, %s1004_s17 }
 0x3a6   : > { %v929_v47 = vpop.eup %928 }
 0x3a7   : > { %625 = vrot.lane.b32.xlu1 %v929_v47, %s1005_s18  ;;  %v931_v51 = vpop.eup %930 }
 0x415   : > { %v621_v50 = vpop.permute.xlu0 %620 }
 0x416   : > { %v623_v52 = vadd.f32 %v931_v51, %v621_v50 }
 0x419   : > { %v626_v53 = vpop.permute.xlu1 %625 }
 0x41a   : > { %v628_v54 = vadd.f32 %v626_v53, %v623_v52 }
 0x41c   : > { %932 = vrcp.f32 %v628_v54 }
 0x41d   : > { %934 = vpow2.f32 %v590_v57 }
 0x426   : > { %v933_v55 = vpop.eup %932 }
 0x427   : > { %632 = vrot.lane.b32.xlu0 %v933_v55, %s1006_s22  ;;  %v935_v58 = vpop.eup %934  ;;  %v630_v63 = vmul.f32 %v933_v55, %v931_v51 }
 0x428   : > { %v592_v59 = vadd.f32 1.0, %v935_v58 }
 0x42a   : > { %936 = vrcp.f32 %v592_v59 }
 0x434   : > { %v937_v2 = vpop.eup %936 }
 0x435   : > { %v641_v5 = vsel %vm640_vm4, %v937_v2, %v630_v63  ;;  %v813_v20 = vadd.f32 -0.5, %v937_v2 }
 0x437   : > { %v654_v21 = vmul.f32 %v813_v20, %v653_v1 }
 0x439   : > { %v655_v22 = vadd.f32 1.0, %v654_v21 }
 0x499   : > { %v633_v0 = vpop.permute.xlu0 %632 }
 0x49a   : > { %v635_v3 = vmul.f32 %v927_v46, %v633_v0 }
 0x49c   : > { %657 = vrot.lane.b32.xlu1 %v635_v3, %s1004_s17  ;;  %v643_v7 = vsel %vm642_vm5, %v641_v5, %v635_v3 }
 0x4a0   : > { %674 = vrot.lane.b32.xlu1 %v667_v8, %s1008_s25 }
 0x4a4   : > { %636 = vrot.lane.b32.xlu1 %v933_v55, %s1007_s23  ;;  %s1200_s23 = scalar_lea.hbm %s1252_s9, %s816_s15 }
 0x50e   : > { %v658_v10 = vpop.permute.xlu1 %657 }
 0x50f   : > { %v660_v11 = vsub.f32 %v630_v63, %v658_v10 }
 0x511   : > { %v661_v12 = vmul.f32 %v660_v11, %v653_v1 }
 0x512   : > { %v675_v13 = vpop.permute.xlu1 %674 }
 0x513   : > { %v662_v14 = vadd.f32 1.0, %v661_v12 }
 0x515   : > { %669 = vrot.lane.b32.xlu0 %v662_v14, %s1004_s17  ;;  %s331_s17 = scalar_lea.vmem [#allocation3], %s793_s30 }
 0x516   : > { %v637_v15 = vpop.permute.xlu1 %636  ;;  %s706_s18 = sshll.u32 %s331_s17, 4  ;;  %s1202_s18 = int_to_ptr.vmem [resolvable:$true] %s706_s18 }
 0x517   : > { %v639_v16 = vmul.f32 %v929_v47, %v637_v15  ;;  %s938_s25 = scalar_lea.vmem %s1202_s18, 128  ;;  %p945_p0 = scmp.lt.s32.totalorder %s1202_s18, %s943_s26 }
 0x518   : > { %p939_p11 = scmp.ne.s32.totalorder %s1202_s18, %s938_s25  ;;  %p946_p1 = scmp.lt.s32.totalorder %s944_s27, %s938_s25 }
 0x519   : > { %v645_v17 = vsel %vm644_vm6, %v643_v7, %v639_v16 }
 0x51a   : > { %v647_v18 = vsel %vm646_vm7, %v645_v17, %v1172_v32  ;;  %p940_p12 = pnand %p939_p11, %p1102_p5  ;;  %p947_p2 = por %p946_p1, %p945_p0 }
 0x51b   : > { %v649_v19 = vsel %vm648_vm8, %v647_v18, 0.0 }
 0x51c   : > { %651 = vst.msk [vmem:[%s339_s29] sm:$0xff] %vm650_vm9, %v649_v19  ;;  %p941_p13 = pneg %p940_p12 }
 0x51e   : > { %p948_p3 = pnand %p947_p2, %p941_p13 }
 0x587   : > { %v670_v23 = vpop.permute.xlu0 %669 }
 0x588   : > { %v672_v24 = vmul.f32 %v670_v23, %v655_v22 }
 0x58a   : > { %v677_v25 = vmul.f32 %v675_v13, %v672_v24 }
 0x58c   : > { %680 = vperm.xlu0 %914, %v677_v25  }
 0x60b   : > { %v681_v26 = vpop.permute.xlu0 %680 }
 0x60c   : > { %v683_v27 = vmul.f32 %v681_v26, %v1139_v6 }
 0x60e   : > { %684 = vst.msk [vmem:[%s331_s17] sm:$0xff] %vm367_vm1, %v683_v27 }
 0x60f   : > { %951 = shalt.err (!%p948_p3)
}
 0x610   : > { %s952_s29 = scalar_lea.hbm %s1200_s23, 128  ;;  %s956_s15 = scalar_lea.hbm %s1252_s9, 256 }
 0x611   : > { %p953_p4 = scmp.ne.s32.totalorder %s1200_s23, %s952_s29  ;;  %p957_p9 = scmp.lt.u32.totalorder %s1200_s23, %s1252_s9 }
 0x612   : > { %p958_p10 = scmp.lt.u32.totalorder %s956_s15, %s952_s29  ;;  %p960_p12 = scmp.lt.u32.totalorder %s952_s29, %s1200_s23 }
 0x613   : > { %p954_p7 = pnand %p953_p4, %p1102_p5 }
 0x614   : > { %p959_p11 = por %p958_p10, %p957_p9 }
 0x615   : > { %p955_p8 = pneg %p954_p7 }
 0x616   : > { %p961_p13 = por %p960_p12, %p959_p11 }
 0x618   : > { %p962_p0 = pnand %p961_p13, %p955_p8 }
 0x61a   : > { %965 = shalt.err (!%p962_p0)
}
 0x61b   : > { %867 = dma.vmem_to_hbm [thread:$0]  (%p1102_p5), %s1202_s18, 128, %s1200_s23, %s690_s24  }
 0x61c PF: > { %p873_p1 = scmp.ge.s32.totalorder %s1000_s14, 2  ;;  %s725_s22 = sand.u32 1, %s988_s11  }
 0x61d   : > { %s726_s25 = scalar_lea.sflag [#allocation4], %s725_s22 }
 0x61e   : > { %p870_p2 = pnand %p873_p1, %p1106_p6 }
 0x620   : > { %983 = dma.done.wait (!%p870_p2), %s726_s25, 128  }
 0x621   : > { %985 = vsyncadd (!%p870_p2), %s726_s25, 4294967168  ;;  %p21_p3 = scmp.ge.s32.totalorder %s1089_s16, 4   ;;  %s1255_s11 = smov %s992_s12 }
 0x622   : > { %s1256_s12 = smov %s996_s13  ;;  %s1257_s13 = smov %s1100_s19 }
 0x623   : > { %s1258_s14 = smov %s1089_s16  ;;  %23 = sbr.rel (!%p21_p3) target bundleno = 5 (0x5), region = 99 }
 0x62a   :  { %731 = vsyncpa [#allocation4], 1 }
 0x62b   :  { %733 = vsyncpa [#allocation4 + $0x1], 1 }

</bundles_post_ra>
